<compile_context>
chip_gen: v7x
topology: tpu7x:2x2x1
jax: 0.10.0
libtpu: 0.0.40
codegen_flags: <defaults>
</compile_context>

<pallas_src>
import functools

import jax
import jax.numpy as jnp
from jax.experimental import pallas as pl
from jax.experimental.pallas import tpu as pltpu

_BN_EPS = 1e-5


def _round_up(v, m):
    return ((v + m - 1) // m) * m


# --------------------------------------------------------------------------- kernels
def _conv_stats_kernel(x_ref, w_ref, sum_ref, sq_ref):
    """BN pass 1 (recompute path): y = W @ x tile; per-batch per-channel sum/sumsq."""
    y = jnp.dot(w_ref[...], x_ref[...], preferred_element_type=jnp.float32)

    @pl.when(pl.program_id(1) == 0)
    def _init():
        sum_ref[...] = jnp.zeros_like(sum_ref)
        sq_ref[...] = jnp.zeros_like(sq_ref)

    # Zero-padded rows/columns contribute exactly 0 to both sums.
    sum_ref[...] += jnp.sum(y, axis=1, keepdims=True)
    sq_ref[...] += jnp.sum(y * y, axis=1, keepdims=True)


def _conv_stats_y_kernel(x_ref, w_ref, y_ref, sum_ref, sq_ref):
    """BN pass 1 (wide-contraction path): same, but also materialize y as bf16."""
    y = jnp.dot(w_ref[...], x_ref[...], preferred_element_type=jnp.float32)
    y_ref[...] = y.astype(y_ref.dtype)

    @pl.when(pl.program_id(1) == 0)
    def _init():
        sum_ref[...] = jnp.zeros_like(sum_ref)
        sq_ref[...] = jnp.zeros_like(sq_ref)

    sum_ref[...] += jnp.sum(y, axis=1, keepdims=True)
    sq_ref[...] += jnp.sum(y * y, axis=1, keepdims=True)


def _conv_bn_act_kernel(x_ref, w_ref, scale_ref, shift_ref, o_ref, *, act):
    """BN pass 2 (recompute path): out = (W @ x) * scale + shift, optional ReLU."""
    y = jnp.dot(w_ref[...], x_ref[...], preferred_element_type=jnp.float32)
    out = y * scale_ref[...] + shift_ref[...]
    if act:
        out = jnp.maximum(out, 0.0)
    o_ref[...] = out.astype(o_ref.dtype)


def _bn_act_kernel(y_ref, scale_ref, shift_ref, o_ref, *, act):
    """BN pass 2 (wide-contraction path): out = y * scale + shift, optional ReLU."""
    out = y_ref[...].astype(jnp.float32) * scale_ref[...] + shift_ref[...]
    if act:
        out = jnp.maximum(out, 0.0)
    o_ref[...] = out.astype(o_ref.dtype)


def _conv_bias_act_kernel(x_ref, w_ref, b_ref, o_ref, *, act):
    """No-BN path: out = W @ x + b, optional ReLU."""
    y = jnp.dot(w_ref[...], x_ref[...], preferred_element_type=jnp.float32) + b_ref[...]
    if act:
        y = jnp.maximum(y, 0.0)
    o_ref[...] = y.astype(o_ref.dtype)


# --------------------------------------------------------------------------- sizing
def _vmem_budget_bytes():
    """(working-set budget, vmem_limit cap) parameterized by TPU generation."""
    cap = 64 << 20                      # conservative default (v7x-safe)
    try:
        cap = int(getattr(pltpu.get_tpu_info(), "vmem_capacity_bytes", cap))
    except Exception:
        pass
    if cap <= (64 << 20):               # v7x: 64 MiB VMEM per TensorCore
        return 26 << 20, 48 << 20
    return 64 << 20, 96 << 20           # v5e / v6e: 128 MiB physical VMEM


def _working_set_bytes(tl, cik_p, co_p, x_item):
    # Double-buffered input/output slabs + a single resident weight block + slack.
    io = 2 * (cik_p * tl * x_item + co_p * tl * 4)
    return io + co_p * cik_p * x_item + (2 << 20)


def _pick_tile_l(l_out, cik_p, co_p, x_item, budget):
    """Largest lane-dense (128-multiple) L tile under budget, then shrink to cap padding."""
    tl = 2048
    while tl > 128 and _working_set_bytes(tl, cik_p, co_p, x_item) > budget:
        tl -= 128
    # TODO(synk): if even TL=128 exceeds the budget (very large Ci*K), add a
    # contraction-axis grid dim with a VMEM f32 accumulator instead of relying on
    # vmem_limit headroom.
    l128 = _round_up(l_out, 128)
    if l128 <= tl:
        return l128                     # single tile, padding only up to 128-alignment
    n_tiles = -(-l128 // tl)
    return _round_up(-(-l_out // n_tiles), 128)   # even split caps padding waste


# --------------------------------------------------------------------------- wrapper
def conv1d_bn_relu(x, weight, bias, gamma, beta, *, stride=1, if_bn=True,
                   use_relu=True, compute_dtype=None):
    """relu(BatchNorm1d(Conv1d(x))) with training-mode batch statistics.

    x: (B, Ci, L); weight: (Co, Ci, K); bias/gamma/beta: (Co,).
    Returns (B, Co, L_out) f32, matching the PyTorch module's forward pass.
    """
    B, Ci, L = x.shape
    Co, Ci_w, K = weight.shape
    assert Ci == Ci_w
    L_out = (L - K) // stride + 1
    assert L_out >= 1

    # --- im2col / unfold (plain-JAX glue; already in the (B, Ci*K, L_out) layout the
    #     kernel consumes, so no transpose).  K == 1 (module default) is a pure slice.
    if K == 1:
        x_unf = x[:, :, : stride * L_out : stride]                      # (B, Ci, L_out)
    else:
        # TODO(synk): for K > 1 read K shifted slices inside the kernel instead of
        # duplicating the input K times in HBM here.
        patches = jnp.stack(
            [x[:, :, k : k + stride * L_out : stride] for k in range(K)], axis=2)
        x_unf = patches.reshape(B, Ci * K, L_out)

    CiK = Ci * K
    x_item = int(jnp.dtype(compute_dtype).itemsize) if compute_dtype is not None else 4
    align = 16 if x_item == 2 else 8            # bf16 packs two rows per sublane
    CiK_p = _round_up(CiK, align)
    Co_p = _round_up(Co, align)

    budget, limit_cap = _vmem_budget_bytes()
    TL = _pick_tile_l(L_out, CiK_p, Co_p, x_item, budget)
    L_pad = _round_up(L_out, TL)
    nL = L_pad // TL
    vmem_limit = int(min(max(int(1.5 * _working_set_bytes(TL, CiK_p, Co_p, x_item)),
                             16 << 20), limit_cap))

    # Zero-pad to aligned slabs (matmul stays exact; padding adds nothing to BN sums).
    x3d = jnp.pad(x_unf, ((0, 0), (0, CiK_p - CiK), (0, L_pad - L_out)))
    w2d = jnp.pad(weight.reshape(Co, CiK), ((0, Co_p - Co), (0, CiK_p - CiK)))
    if compute_dtype is not None:
        x3d = x3d.astype(compute_dtype)
        w2d = w2d.astype(compute_dtype)
    else:
        x3d = x3d.astype(jnp.float32)
        w2d = w2d.astype(jnp.float32)

    grid = (B, nL)
    x_spec = pl.BlockSpec((None, CiK_p, TL), lambda b, l: (b, 0, l))
    w_spec = pl.BlockSpec((Co_p, CiK_p), lambda b, l: (0, 0))         # resident weight
    out_spec = pl.BlockSpec((None, Co_p, TL), lambda b, l: (b, 0, l))
    vec_spec = pl.BlockSpec((Co_p, 1), lambda b, l: (0, 0))           # scale/shift/bias
    acc_spec = pl.BlockSpec((None, Co_p, 1), lambda b, l: (b, 0, 0))  # per-batch stats

    mm_flops = int(2 * Co_p * CiK_p * B * L_pad)
    x_bytes = int(x3d.size * x3d.dtype.itemsize)
    w_bytes = int(w2d.size * w2d.dtype.itemsize)
    out_bytes = int(B * Co_p * L_pad * 4)

    if if_bn:
        # Pass 2 recomputes W @ x when re-reading x is cheaper than a y round-trip;
        # otherwise pass 1 materializes a bf16 intermediate (stats stay f32-exact).
        recompute = CiK_p * x_item <= 2 * Co_p * 4

        if recompute:
            ysum, ysq = pl.pallas_call(
                _conv_stats_kernel,
                out_shape=(jax.ShapeDtypeStruct((B, Co_p, 1), jnp.float32),
                           jax.ShapeDtypeStruct((B, Co_p, 1), jnp.float32)),
                grid=grid,
                in_specs=[x_spec, w_spec],
                out_specs=(acc_spec, acc_spec),
                compiler_params=pltpu.CompilerParams(
                    dimension_semantics=("parallel", "arbitrary"),
                    vmem_limit_bytes=vmem_limit),
                cost_estimate=pl.CostEstimate(
                    flops=mm_flops, transcendentals=0,
                    bytes_accessed=x_bytes + w_bytes),
            )(x3d, w2d)
            y3d = None
        else:
            y3d, ysum, ysq = pl.pallas_call(
                _conv_stats_y_kernel,
                out_shape=(jax.ShapeDtypeStruct((B, Co_p, L_pad), jnp.bfloat16),
                           jax.ShapeDtypeStruct((B, Co_p, 1), jnp.float32),
                           jax.ShapeDtypeStruct((B, Co_p, 1), jnp.float32)),
                grid=grid,
                in_specs=[x_spec, w_spec],
                out_specs=(out_spec, acc_spec, acc_spec),
                compiler_params=pltpu.CompilerParams(
                    dimension_semantics=("parallel", "arbitrary"),
                    vmem_limit_bytes=vmem_limit),
                cost_estimate=pl.CostEstimate(
                    flops=mm_flops, transcendentals=0,
                    bytes_accessed=x_bytes + w_bytes + out_bytes // 2),
            )(x3d, w2d)

        # Tiny per-channel finalize in plain JAX: fold mean/var/gamma/beta into one
        # scale/shift so pass 2 is a single fused multiply-add (+ ReLU).
        inv_n = 1.0 / float(B * L_out)            # true count; padding contributes 0
        total = jnp.sum(ysum[:, :, 0], axis=0)    # hierarchical per-batch partials
        total_sq = jnp.sum(ysq[:, :, 0], axis=0)
        mean = total * inv_n
        var = jnp.maximum(total_sq * inv_n - mean * mean, 0.0)   # biased variance
        gamma_p = jnp.pad(gamma.astype(jnp.float32), (0, Co_p - Co))
        beta_p = jnp.pad(beta.astype(jnp.float32), (0, Co_p - Co))
        scale = (gamma_p * jax.lax.rsqrt(var + _BN_EPS)).reshape(Co_p, 1)
        shift = (beta_p - mean * scale[:, 0]).reshape(Co_p, 1)

        if recompute:
            out3d = pl.pallas_call(
                functools.partial(_conv_bn_act_kernel, act=use_relu),
                out_shape=jax.ShapeDtypeStruct((B, Co_p, L_pad), jnp.float32),
                grid=grid,
                in_specs=[x_spec, w_spec, vec_spec, vec_spec],
                out_specs=out_spec,
                compiler_params=pltpu.CompilerParams(
                    dimension_semantics=("parallel", "parallel"),
                    vmem_limit_bytes=vmem_limit),
                cost_estimate=pl.CostEstimate(
                    flops=mm_flops + 2 * B * Co_p * L_pad, transcendentals=0,
                    bytes_accessed=x_bytes + w_bytes + out_bytes),
            )(x3d, w2d, scale, shift)
        else:
            out3d = pl.pallas_call(
                functools.partial(_bn_act_kernel, act=use_relu),
                out_shape=jax.ShapeDtypeStruct((B, Co_p, L_pad), jnp.float32),
                grid=grid,
                in_specs=[out_spec, vec_spec, vec_spec],
                out_specs=out_spec,
                compiler_params=pltpu.CompilerParams(
                    dimension_semantics=("parallel", "parallel"),
                    vmem_limit_bytes=vmem_limit),
                cost_estimate=pl.CostEstimate(
                    flops=2 * B * Co_p * L_pad, transcendentals=0,
                    bytes_accessed=out_bytes // 2 + out_bytes),
            )(y3d, scale, shift)
    else:
        bias_p = jnp.pad(bias.astype(jnp.float32), (0, Co_p - Co)).reshape(Co_p, 1)
        out3d = pl.pallas_call(
            functools.partial(_conv_bias_act_kernel, act=use_relu),
            out_shape=jax.ShapeDtypeStruct((B, Co_p, L_pad), jnp.float32),
            grid=grid,
            in_specs=[x_spec, w_spec, vec_spec],
            out_specs=out_spec,
            compiler_params=pltpu.CompilerParams(
                dimension_semantics=("parallel", "parallel"),
                vmem_limit_bytes=vmem_limit),
            cost_estimate=pl.CostEstimate(
                flops=mm_flops, transcendentals=0,
                bytes_accessed=x_bytes + w_bytes + out_bytes),
        )(x3d, w2d, bias_p)

    # Unpad; already in the PyTorch (B, Co, L_out) layout -- no transpose needed.
    return out3d[:, :Co, :L_out]


# --------------------------------------------------------------------------- reference
def _reference(x, weight, bias, gamma, beta, stride, if_bn, use_relu):
    y = jax.lax.conv_general_dilated(
        x, weight, window_strides=(stride,), padding="VALID",
        dimension_numbers=("NCH", "OIH", "NCH"))
    y = y + bias[None, :, None]
    if if_bn:
        mean = jnp.mean(y, axis=(0, 2), keepdims=True)
        var = jnp.mean(jnp.square(y - mean), axis=(0, 2), keepdims=True)
        y = (y - mean) * jax.lax.rsqrt(var + _BN_EPS)
        y = y * gamma[None, :, None] + beta[None, :, None]
    if use_relu:
        y = jnp.maximum(y, 0.0)
    return y


if __name__ == "__main__":
    key = jax.random.PRNGKey(0)
    k_x, k_w, k_b, k_x2, k_w2 = jax.random.split(key, 5)

    # Small shapes consistent with the module defaults: kernel_size=1, stride=1.
    B, Ci, Co, L, K = 2, 4, 8, 16, 1
    x = jax.random.normal(k_x, (B, Ci, L), dtype=jnp.float32)
    fan_in = Ci * K
    bound = 1.0 / (fan_in ** 0.5)
    weight = jax.random.uniform(k_w, (Co, Ci, K), jnp.float32, -bound, bound)
    bias = jax.random.uniform(k_b, (Co,), jnp.float32, -bound, bound)
    gamma = jnp.ones((Co,), jnp.float32)   # BatchNorm1d.weight
    beta = jnp.zeros((Co,), jnp.float32)   # BatchNorm1d.bias

    # BN + ReLU path (module defaults; pass 2 recomputes the matmul -> exact f32).
    out = conv1d_bn_relu(x, weight, bias, gamma, beta, stride=1, if_bn=True, use_relu=True)
    out = jax.block_until_ready(out)
    ref = _reference(x, weight, bias, gamma, beta, 1, True, True)
    assert out.shape == (B, Co, L)
    assert bool(jnp.allclose(out, ref, atol=1e-4, rtol=1e-4)), \
        float(jnp.max(jnp.abs(out - ref)))

    # No-BN path (conv + bias + ReLU fused in a single pass).
    out2 = conv1d_bn_relu(x, weight, bias, gamma, beta, stride=1, if_bn=False, use_relu=True)
    out2 = jax.block_until_ready(out2)
    ref2 = _reference(x, weight, bias, gamma, beta, 1, False, True)
    assert bool(jnp.allclose(out2, ref2, atol=1e-4, rtol=1e-4)), \
        float(jnp.max(jnp.abs(out2 - ref2)))

    # Wide-contraction BN path (Ci*K > 2*Co): exercises the bf16 intermediate.
    Ci3, Co3, L3 = 64, 16, 256
    x3 = jax.random.normal(k_x2, (B, Ci3, L3), dtype=jnp.float32)
    bound3 = 1.0 / (Ci3 ** 0.5)
    w3 = jax.random.uniform(k_w2, (Co3, Ci3, 1), jnp.float32, -bound3, bound3)
    b3 = jnp.zeros((Co3,), jnp.float32)
    g3 = jnp.ones((Co3,), jnp.float32)
    be3 = jnp.zeros((Co3,), jnp.float32)
    out3 = conv1d_bn_relu(x3, w3, b3, g3, be3, stride=1, if_bn=True, use_relu=True)
    out3 = jax.block_until_ready(out3)
    ref3 = _reference(x3, w3, b3, g3, be3, 1, True, True)
    assert out3.shape == (B, Co3, L3)
    assert bool(jnp.allclose(out3, ref3, atol=2e-2, rtol=2e-2)), \
        float(jnp.max(jnp.abs(out3 - ref3)))

    print("KERNEL_OK")
</pallas_src>

<mosaic_0001>
module attributes {stable_mosaic.version = 11 : i64} {
  func.func @_conv_stats_kernel(%arg0: i32, %arg1: i32, %arg2: memref<1x8x128xf32, #tpu.memory_space<vmem>>, %arg3: memref<8x8xf32, #tpu.memory_space<vmem>>, %arg4: memref<1x8x1xf32, #tpu.memory_space<vmem>>, %arg5: memref<1x8x1xf32, #tpu.memory_space<vmem>>) attributes {dimension_semantics = [#tpu.dimension_semantics<parallel>, #tpu.dimension_semantics<arbitrary>], iteration_bounds = array<i64: 2, 1>, scalar_prefetch = 0 : i64, scratch_operands = 0 : i64, tpu.core_type = #tpu.core_type<tc>, window_params = [{transform_indices = @transform_0, window_bounds = array<i64: 1, 8, 128>}, {pipeline_mode = #tpu.pipeline_mode<synchronous>, transform_indices = @transform_1, window_bounds = array<i64: 8, 8>}, {transform_indices = @transform_2, window_bounds = array<i64: 1, 8, 1>}, {transform_indices = @transform_3, window_bounds = array<i64: 1, 8, 1>}]} {
    %c0 = arith.constant 0 : index
    %c0_0 = arith.constant 0 : index
    %0 = vector.load %arg3[%c0, %c0_0] : memref<8x8xf32, #tpu.memory_space<vmem>>, vector<8x8xf32>
    %c0_1 = arith.constant 0 : index
    %c0_2 = arith.constant 0 : index
    %c0_3 = arith.constant 0 : index
    %1 = vector.load %arg2[%c0_1, %c0_2, %c0_3] : memref<1x8x128xf32, #tpu.memory_space<vmem>>, vector<1x8x128xf32>
    %2 = vector.shape_cast %1 : vector<1x8x128xf32> to vector<8x128xf32>
    %cst = arith.constant dense<0.000000e+00> : vector<8x128xf32>
    %3 = tpu.matmul %0, %2, %cst {dimension_numbers = #tpu.dot_dimension_numbers<[1], [0], [0], [1], [0, 0, 1, 1], [], []>} : vector<8x8xf32>, vector<8x128xf32>, vector<8x128xf32> -> vector<8x128xf32>
    %c0_i32 = arith.constant 0 : i32
    %4 = arith.cmpi eq, %arg1, %c0_i32 : i32
    %5 = arith.extui %4 : i1 to i32
    %c0_i32_4 = arith.constant 0 : i32
    %6 = arith.cmpi ne, %5, %c0_i32_4 : i32
    scf.if %6 {
      %cst_19 = arith.constant 0.000000e+00 : f32
      %24 = vector.broadcast %cst_19 : f32 to vector<8x1xf32>
      %c0_20 = arith.constant 0 : index
      %c0_21 = arith.constant 0 : index
      %c0_22 = arith.constant 0 : index
      %25 = vector.load %arg4[%c0_20, %c0_21, %c0_22] : memref<1x8x1xf32, #tpu.memory_space<vmem>>, vector<1x8x1xf32>
      %26 = vector.shape_cast %25 : vector<1x8x1xf32> to vector<8x1xf32>
      %27 = vector.shape_cast %24 : vector<8x1xf32> to vector<1x8x1xf32>
      tpu.vector_store %arg4[%c0_20, %c0_21, %c0_22], %27 {strides = array<i32>} : memref<1x8x1xf32, #tpu.memory_space<vmem>>, vector<1x8x1xf32>,
      %cst_23 = arith.constant 0.000000e+00 : f32
      %28 = vector.broadcast %cst_23 : f32 to vector<8x1xf32>
      %c0_24 = arith.constant 0 : index
      %c0_25 = arith.constant 0 : index
      %c0_26 = arith.constant 0 : index
      %29 = vector.load %arg5[%c0_24, %c0_25, %c0_26] : memref<1x8x1xf32, #tpu.memory_space<vmem>>, vector<1x8x1xf32>
      %30 = vector.shape_cast %29 : vector<1x8x1xf32> to vector<8x1xf32>
      %31 = vector.shape_cast %28 : vector<8x1xf32> to vector<1x8x1xf32>
      tpu.vector_store %arg5[%c0_24, %c0_25, %c0_26], %31 {strides = array<i32>} : memref<1x8x1xf32, #tpu.memory_space<vmem>>, vector<1x8x1xf32>,
    } else {
    }
    %c0_5 = arith.constant 0 : index
    %c0_6 = arith.constant 0 : index
    %c0_7 = arith.constant 0 : index
    %7 = vector.load %arg4[%c0_5, %c0_6, %c0_7] : memref<1x8x1xf32, #tpu.memory_space<vmem>>, vector<1x8x1xf32>
    %8 = vector.shape_cast %7 : vector<1x8x1xf32> to vector<8x1xf32>
    %cst_8 = arith.constant dense<0.000000e+00> : vector<8xf32>
    %9 = vector.multi_reduction <add>, %3, %cst_8 [1] : vector<8x128xf32> to vector<8xf32>
    %10 = vector.shape_cast %9 : vector<8xf32> to vector<8x1xf32>
    %11 = arith.addf %8, %10 : vector<8x1xf32>
    %c0_9 = arith.constant 0 : index
    %c0_10 = arith.constant 0 : index
    %c0_11 = arith.constant 0 : index
    %12 = vector.load %arg4[%c0_9, %c0_10, %c0_11] : memref<1x8x1xf32, #tpu.memory_space<vmem>>, vector<1x8x1xf32>
    %13 = vector.shape_cast %12 : vector<1x8x1xf32> to vector<8x1xf32>
    %14 = vector.shape_cast %11 : vector<8x1xf32> to vector<1x8x1xf32>
    tpu.vector_store %arg4[%c0_9, %c0_10, %c0_11], %14 {strides = array<i32>} : memref<1x8x1xf32, #tpu.memory_space<vmem>>, vector<1x8x1xf32>,
    %c0_12 = arith.constant 0 : index
    %c0_13 = arith.constant 0 : index
    %c0_14 = arith.constant 0 : index
    %15 = vector.load %arg5[%c0_12, %c0_13, %c0_14] : memref<1x8x1xf32, #tpu.memory_space<vmem>>, vector<1x8x1xf32>
    %16 = vector.shape_cast %15 : vector<1x8x1xf32> to vector<8x1xf32>
    %17 = arith.mulf %3, %3 : vector<8x128xf32>
    %cst_15 = arith.constant dense<0.000000e+00> : vector<8xf32>
    %18 = vector.multi_reduction <add>, %17, %cst_15 [1] : vector<8x128xf32> to vector<8xf32>
    %19 = vector.shape_cast %18 : vector<8xf32> to vector<8x1xf32>
    %20 = arith.addf %16, %19 : vector<8x1xf32>
    %c0_16 = arith.constant 0 : index
    %c0_17 = arith.constant 0 : index
    %c0_18 = arith.constant 0 : index
    %21 = vector.load %arg5[%c0_16, %c0_17, %c0_18] : memref<1x8x1xf32, #tpu.memory_space<vmem>>, vector<1x8x1xf32>
    %22 = vector.shape_cast %21 : vector<1x8x1xf32> to vector<8x1xf32>
    %23 = vector.shape_cast %20 : vector<8x1xf32> to vector<1x8x1xf32>
    tpu.vector_store %arg5[%c0_16, %c0_17, %c0_18], %23 {strides = array<i32>} : memref<1x8x1xf32, #tpu.memory_space<vmem>>, vector<1x8x1xf32>,
    return
  }
  func.func @transform_0(%arg0: i32, %arg1: i32) -> (i32, i32, i32) {
    %c0_i32 = arith.constant 0 : i32
    %c0_i32_0 = arith.constant 0 : i32
    return %arg0, %c0_i32, %arg1 : i32, i32, i32
  }
  func.func @transform_1(%arg0: i32, %arg1: i32) -> (i32, i32) {
    %c0_i32 = arith.constant 0 : i32
    %c0_i32_0 = arith.constant 0 : i32
    %c0_i32_1 = arith.constant 0 : i32
    return %c0_i32, %c0_i32_0 : i32, i32
  }
  func.func @transform_2(%arg0: i32, %arg1: i32) -> (i32, i32, i32) {
    %c0_i32 = arith.constant 0 : i32
    %c0_i32_0 = arith.constant 0 : i32
    %c0_i32_1 = arith.constant 0 : i32
    return %arg0, %c0_i32, %c0_i32_0 : i32, i32, i32
  }
  func.func @transform_3(%arg0: i32, %arg1: i32) -> (i32, i32, i32) {
    %c0_i32 = arith.constant 0 : i32
    %c0_i32_0 = arith.constant 0 : i32
    %c0_i32_1 = arith.constant 0 : i32
    return %arg0, %c0_i32, %c0_i32_0 : i32, i32, i32
  }
}

</mosaic_0001>

<bundles_post_ra>
// kernel: tpu_custom_call.1
= control target key start
LH: loop header
LB: loop body
LE: loop exit
PB: predicated region body
PF: predicated region fallthrough
CT: control target
= control target key end

     0   :  { %9 = vsyncpa [#allocation3], 0  ;;  %s833_s0 = inlined_call_operand.hbm [shape: f32[2,8,128], index: 0, kind: input, shape index: {}]   ;;  %s834_s1 = inlined_call_operand.hbm [shape: f32[8,8], index: 1, kind: input, shape index: {}]   ;;  %s835_s2 = inlined_call_operand.vmem [shape: f32[2,8,1], index: 2, kind: output, shape index: {0}]   ;;  %s836_s3 = inlined_call_operand.vmem [shape: f32[2,8,1], index: 3, kind: output, shape index: {1}]  }
   0x1   :  { %11 = vsyncpa [#allocation3 + $0x1], 0 }
   0x2   :  { %12 = vsyncpa [#allocation5], 0  ;;  %s663_s12 = smov 0   ;;  %s665_s13 = smov 0  }
   0x3   :  { %s667_s14 = smov 0   ;;  %s669_s15 = smov 0  }
   0x4   :  { %s671_s16 = smov 0   ;;  %s673_s17 = smov 0  }
   0x5 LB: > { %s435_s18 = sadd.s32 4294967295, %s637_s17   ;;  %p52_p0 = scmp.ne.s32.totalorder %s621_s13, %s617_s12  ;;  %s637_s17 = sphi %s673_s17, %s18_s17   ;;  %s633_s16 = sphi %s671_s16, %s855_s16   ;;  %s629_s15 = sphi %s669_s15, %s854_s15   ;;  %s625_s14 = sphi %s667_s14, %s853_s14   ;;  %s621_s13 = sphi %s665_s13, %s852_s13   ;;  %s617_s12 = sphi %s663_s12, %s851_s12  }
   0x6   : > { %p693_p1 = scmp.eq.s32.totalorder %s435_s18, 0  ;;  %p437_p2 = scmp.ge.s32.totalorder %s637_s17, 1 }
   0x7   : > { %p136_p3 = scmp.lt.s32.totalorder %s637_s17, 3  ;;  %s639_s22 = smov [#allocation4]  }
   0x8   : > { %s841_s19 = scalar_select %p693_p1, 1, 0 }
   0x9   : > { %p701_p4 = por %p693_p1, %p52_p0  ;;  %p705_p5 = pnand %p437_p2, %p136_p3 }
   0xa   : > { %s149_s23 = sshll.u32 %s639_s22, 4  ;;  %s30_s25 = sadd.s32 1, %s633_s16  ;;  %s150_s23 = int_to_ptr.vmem [resolvable:$true] %s149_s23 }
   0xb   : > { %s842_s20 = scalar_select %p701_p4, 1, 0 }
   0xc   : > { %s843_s21 = scalar_select %p705_p5, 1, 0 }
   0xd   : > { %p463_p6 = pneg %p705_p5  ;;  %s39_s26 = sadd.s32 1, %s625_s14 }
   0xe   : > { %p719_p8 = scmp.ge.s32.totalorder %s30_s25, 2  ;;  %s525_s30 = scalar_lea.hbm %s834_s1, 128 }
   0xf   : > { %p713_p7 = pnand %p463_p6, %p693_p1  ;;  %p526_p9 = scmp.ne.s32.totalorder %s834_s1, %s525_s30 }
  0x10   : > { %s845_s27 = scalar_select %p719_p8, 1, 0 }
  0x11   : > { %p527_p10 = pneg %p713_p7  ;;  %p532_p13 = scmp.lt.u32.totalorder %s525_s30, %s834_s1 }
  0x13   : > { %p528_p11 = pnand %p527_p10, %p526_p9 }
  0x15   : > { %p529_p12 = pneg %p528_p11 }
  0x17   : > { %p534_p0 = pnand %p532_p13, %p529_p12 }
  0x19   : > { %537 = shalt.err (!%p534_p0)
}
  0x1a   : > { %s538_s8 = scalar_lea.vmem %s150_s23, 128  ;;  %p546_p1 = scmp.lt.s32.totalorder %s150_s23, %s150_s23 }
  0x1b   : > { %p539_p2 = scmp.ne.s32.totalorder %s150_s23, %s538_s8  ;;  %p547_p4 = scmp.lt.s32.totalorder %s538_s8, %s538_s8 }
  0x1d   : > { %p541_p3 = pnand %p539_p2, %p527_p10  ;;  %p548_p5 = por %p547_p4, %p546_p1 }
  0x1f   : > { %p542_p6 = pneg %p541_p3 }
  0x21   : > { %p549_p8 = pnand %p548_p5, %p542_p6 }
  0x23   : > { %552 = shalt.err (!%p549_p8)
}
  0x24   : > { %466 = dma.hbm_to_vmem [thread:$0]  (!%p713_p7), %s834_s1, 128, %s150_s23, [#allocation5]  }
  0x25   : > { %p846_p9 = scmp.ne.s32.totalorder %s845_s27, 0  ;;  %p46_p1 = scmp.ne.s32.totalorder %s625_s14, %s621_s13 }
  0x26   : > { %p47_p4 = scmp.eq.s32.totalorder %s637_s17, 0  ;;  %p472_p5 = scmp.lt.s32.totalorder %s637_s17, 2 }
  0x27   : > { %s857_s25 = smov (%p846_p9, %s30_s25), 0  ;;  %s160_s12 = sand.u32 1, %s625_s14  }
  0x28   : > { %s34_s11 = ssub.s32 %s633_s16, %s857_s25  ;;  %p48_p10 = por %p47_p4, %p46_p1 }
  0x29   : > { %p37_p8 = scmp.eq.s32.totalorder %s34_s11, 0  ;;  %s441_s18 = sshll.u32 %s633_s16, 7 }
  0x2a   : > { %s440_s24 = sshll.u32 %s160_s12, 3  ;;  %s759_s23 = scalar_lea.hbm %s833_s0, %s441_s18 }
  0x2b   : > { %s754_s22 = scalar_select %p37_p8, %s625_s14, %s39_s26  }
  0x2c   : > { %s164_s27 = scalar_lea.vmem [#allocation2], %s440_s24  ;;  %p761_p7 = pnand %p472_p5, %p48_p10 }
  0x2d   : > { %s172_s30 = sshll.u32 %s164_s27, 4  ;;  %s161_s26 = scalar_lea.sflag [#allocation3], %s160_s12  ;;  %s765_s30 = int_to_ptr.vmem [resolvable:$true] %s172_s30 }
  0x2e   : > { %s553_s5 = scalar_lea.hbm %s759_s23, 128  ;;  %p555_p12 = pneg %p761_p7 }
  0x2f   : > { %p554_p11 = scmp.ne.s32.totalorder %s759_s23, %s553_s5  ;;  %s558_s8 = scalar_lea.hbm %s833_s0, 256 }
  0x30   : > { %p559_p2 = scmp.lt.u32.totalorder %s759_s23, %s833_s0  ;;  %p560_p3 = scmp.lt.u32.totalorder %s558_s8, %s553_s5 }
  0x31   : > { %p556_p13 = pnand %p555_p12, %p554_p11  ;;  %p562_p9 = scmp.lt.u32.totalorder %s553_s5, %s759_s23 }
  0x32   : > { %p561_p6 = por %p560_p3, %p559_p2 }
  0x33   : > { %p557_p0 = pneg %p556_p13 }
  0x34   : > { %p563_p1 = por %p562_p9, %p561_p6 }
  0x36   : > { %p564_p4 = pnand %p563_p1, %p557_p0 }
  0x38   : > { %567 = shalt.err (!%p564_p4)
}
  0x39   : > { %s568_s11 = scalar_lea.vmem %s765_s30, 128  ;;  %s640_s12 = smov [#allocation2]  }
  0x3a   : > { %p569_p5 = scmp.ne.s32.totalorder %s765_s30, %s568_s11  ;;  %s573_s18 = sshll.u32 %s640_s12, 4  ;;  %s574_s18 = int_to_ptr.vmem [resolvable:$false] %s573_s18 }
  0x3b   : > { %s575_s24 = scalar_lea.vmem %s574_s18, 256  ;;  %p576_p11 = scmp.lt.s32.totalorder %s765_s30, %s574_s18 }
  0x3c   : > { %p571_p8 = pnand %p569_p5, %p555_p12  ;;  %p577_p13 = scmp.lt.s32.totalorder %s575_s24, %s568_s11 }
  0x3e   : > { %p572_p10 = pneg %p571_p8  ;;  %p578_p2 = por %p577_p13, %p576_p11 }
  0x40   : > { %p579_p3 = pnand %p578_p2, %p572_p10 }
  0x42   : > { %582 = shalt.err (!%p579_p3)
}
  0x43   : > { %470 = dma.hbm_to_vmem [thread:$0]  (!%p761_p7), %s759_s23, 128, %s765_s30, %s161_s26  }
  0x44   : > { %p848_p0 = scmp.ne.s32.totalorder %s843_s21, 0 }
  0x45   : > { %s183_s28 = sand.u32 (!%p848_p0), 1, %s621_s13   ;;  %p849_p12 = scmp.ne.s32.totalorder (!%p848_p0), %s842_s20, 0 }
  0x46   : > { %181 = sbr.rel (%p848_p0) target bundleno = 445 (0x1bd), region = 28  ;;  %s443_s29 = sshll.u32 (!%p848_p0), %s183_s28, 3 }
  0x47   : > { %s184_s27 = scalar_lea.sflag (!%p848_p0), [#allocation3], %s183_s28  ;;  %s187_s5 = scalar_lea.vmem (!%p848_p0), [#allocation2], %s443_s29 }
  0x4d   : > { %608 = dma.done.wait (%p849_p12), %s184_s27, 128  }
  0x4e   : > { %610 = vsyncadd (%p849_p12), %s184_s27, 4294967168  ;;  %p850_p6 = scmp.ne.s32.totalorder %s841_s19, 0 }
  0x50   : > { %612 = dma.done.wait (%p850_p6), [#allocation5], 128  }
  0x51   : > { %614 = vsyncadd (%p850_p6), [#allocation5], 4294967168  ;;  %v641_v0 = vmov 0.0   ;;  %vm642_vm0 = vmmov 0   ;;  %vm227_vm1 = vcmask 64512   ;;  %v226_v1 = vld [vmem:[%s187_s5] sm:$0xff] }
  0x52   : > { %452 = vmatprep.subr.mxu0 %v641_v0  ;;  %454 = vmatprep.mubr.msk.f32.mxu0 %vm642_vm0, %v641_v0  ;;  %v225_v2 = vld [vmem:[#allocation4] sm:$0xff]  ;;  %p217_p7 = scmp.lt.s32.totalorder %s629_s15, 1  ;;  %vm305_vm2 = vcmask 7168  }
  0x53   : > { %453 = vmatpush3.msra.mxu0 %v226_v1 }
  0x54   : > { %455 = vmatmul.mubr.msk.f32.vlgmr.msra.gmra.mrb[0].mxu0 %vm227_vm1, %v225_v2  ;;  %s859_s15 = smov (!%p217_p7, %s629_s15), 1 }
  0x55   : > { %s445_s20 = sshll.u32 %s859_s15, 3 }
  0x56   : > { %s220_s19 = scalar_lea.vmem %s835_s2, %s445_s20  ;;  %s224_s26 = scalar_lea.vmem %s836_s3, %s445_s20 }
  0x57   : > { %306 = vst.msk [vmem:[%s220_s19] sm:$0xff] %vm305_vm2, %v641_v0  ;;  %307 = vst.msk [vmem:[%s224_s26] sm:$0xff] %vm305_vm2, %v641_v0 }
  0x5e   : > { %v308_v6 = vld [vmem:[%s220_s19] sm:$0xff] }
  0x5f   : > { %v314_v9 = vld [vmem:[%s224_s26] sm:$0xff] }
 0x127   : > { %v297_v3 = vpop.f32.mrb[0].mxu0 }
 0x128   : > { %309 = vadd.xlane.f32.xlu0 %v297_v3  ;;  %v456_v4 = vpop.f32.mrb[1].mxu0  ;;  %v315_v5 = vmul.f32 %v297_v3, %v297_v3 }
 0x12c   : > { %316 = vadd.xlane.f32.xlu0 %v315_v5 }
 0x1b5   : > { %v310_v7 = vpop.xlane.xlu0 %309 }
 0x1b6   : > { %v311_v8 = vadd.f32 %v310_v7, %v308_v6 }
 0x1b8   : > { %313 = vst.msk [vmem:[%s220_s19] sm:$0xff] %vm305_vm2, %v311_v8 }
 0x1b9   : > { %v317_v10 = vpop.xlane.xlu0 %316 }
 0x1ba   : > { %v318_v11 = vadd.f32 %v317_v10, %v314_v9 }
 0x1bc   : > { %319 = vst.msk [vmem:[%s224_s26] sm:$0xff] %vm305_vm2, %v318_v11 }
 0x1bd PF: > { %s18_s17 = sadd.s32 1, %s637_s17   ;;  %s851_s12 = smov %s621_s13 }
 0x1be   : > { %p15_p9 = scmp.ge.s32.totalorder %s18_s17, 4   ;;  %s852_s13 = smov %s625_s14 }
 0x1bf   : > { %s853_s14 = smov %s754_s22  ;;  %s854_s15 = smov %s633_s16 }
 0x1c0   : > { %s855_s16 = smov %s857_s25  ;;  %17 = sbr.rel (!%p15_p9) target bundleno = 5 (0x5), region = 88 }
 0x1c7   :  { %353 = vsyncpa [#allocation3], 1 }
 0x1c8   :  { %355 = vsyncpa [#allocation3 + $0x1], 1 }
 0x1c9   :  { %356 = vsyncpa [#allocation5], 1 }

</bundles_post_ra>
